<compile_context>
chip_gen: v6e
topology: v6e:2x2x1
jax: 0.10.0
libtpu: 0.0.40
codegen_flags: <defaults>
</compile_context>

<pallas_src>
import jax
import jax.numpy as jnp
from jax import lax
from jax.experimental import pallas as pl
from jax.experimental.pallas import tpu as pltpu


# ----------------------------------------------------------------------------
# Kernel 1: 1x1-conv Q/K/V projections (channel matmuls on the MXU), bf16 out.
# ----------------------------------------------------------------------------
def _qkv_projection_kernel(x_ref, wq_ref, bq_ref, wk_ref, wv_ref, bv_ref,
                           q_ref, k_ref, v_ref):
    # x_ref : (C, tn) f32 spatial tile
    # wq/wk : (Cq, C) bf16 ; wv : (C, C) bf16
    # bq    : (Cq, 1) f32  ; bv : (C, 1) f32   (bk is dropped: cancels in softmax)
    # q_ref/k_ref : (Cq, tn) bf16 ; v_ref : (C, tn) bf16
    x_b = x_ref[...].astype(jnp.bfloat16)
    q = jnp.dot(wq_ref[...], x_b, preferred_element_type=jnp.float32) + bq_ref[...]
    k = jnp.dot(wk_ref[...], x_b, preferred_element_type=jnp.float32)
    v = jnp.dot(wv_ref[...], x_b, preferred_element_type=jnp.float32) + bv_ref[...]
    q_ref[...] = q.astype(jnp.bfloat16)
    k_ref[...] = k.astype(jnp.bfloat16)
    v_ref[...] = v.astype(jnp.bfloat16)


# ----------------------------------------------------------------------------
# Kernel 2: flash-attention over precomputed bf16 q/k/v + gamma residual.
# ----------------------------------------------------------------------------
def _flash_attention_kernel(q_ref, k_ref, v_ref, x_ref, gamma_ref, o_ref,
                            m_sc, l_sc, acc_sc):
    # q_ref : (Cq, tq) bf16 query tile
    # k_ref : (Cq, tk) bf16 kv tile
    # v_ref : (C,  tk) bf16 kv tile
    # x_ref : (C,  tq) f32  residual tile (block index constant along kv axis
    #         -> DMA'd once per query tile, read only in finalize)
    # gamma : (1,) f32 in SMEM
    # o_ref : (C,  tq) f32
    # scratch (persist across kv axis): m_sc, l_sc (1, tq) f32; acc_sc (C, tq) f32
    ki = pl.program_id(2)

    @pl.when(ki == 0)
    def _init():
        m_sc[...] = jnp.full_like(m_sc, -jnp.inf)
        l_sc[...] = jnp.zeros_like(l_sc)
        acc_sc[...] = jnp.zeros_like(acc_sc)

    # s[j, i] = <k_j, q_i>: kv index on sublanes, query index on lanes.
    # Contract dim 0 of both operands (no transpose materialized).
    s = lax.dot_general(
        k_ref[...], q_ref[...],
        dimension_numbers=(((0,), (0,)), ((), ())),
        preferred_element_type=jnp.float32)                          # (tk, tq)

    # Online softmax over the kv (sublane) axis == nn.Softmax(dim=-1) on energy.
    m_prev = m_sc[...]
    m_new = jnp.maximum(m_prev, jnp.max(s, axis=0, keepdims=True))   # (1, tq)
    alpha = jnp.exp(m_prev - m_new)                                  # (1, tq)
    p = jnp.exp(s - m_new)                                           # (tk, tq)
    l_sc[...] = alpha * l_sc[...] + jnp.sum(p, axis=0, keepdims=True)
    acc_sc[...] = alpha * acc_sc[...] + jnp.dot(
        v_ref[...], p.astype(jnp.bfloat16),
        preferred_element_type=jnp.float32)                          # (C, tq)
    m_sc[...] = m_new

    @pl.when(ki == pl.num_programs(2) - 1)
    def _finalize():
        # Exact divide (runs once per query tile; negligible cost, better numerics).
        attn_out = acc_sc[...] / l_sc[...]                           # (C, tq)
        o_ref[...] = (gamma_ref[0] * attn_out + x_ref[...]).astype(o_ref.dtype)


def _pick_tile(n, pref):
    """Largest power-of-two tile <= pref that divides n (and 128 | tile); else full extent."""
    if n % 128 == 0:
        t = pref
        while n % t:
            t //= 2
        return t
    return n


def self_attention_pallas(x_nchw, wq, bq, wk, bk, wv, bv, gamma,
                          *, tq=None, tk=None, tn=None):
    """x_nchw: (B, C, H, W) float32. Conv weights in PyTorch layout (out, in, 1, 1).

    bk is accepted for API parity but unused: the key bias is constant along the
    softmax axis and cancels exactly in the attention weights.
    """
    del bk  # cancels in softmax
    B, C, H, W = x_nchw.shape
    N = H * W
    Cq = wq.shape[0]

    # NCHW -> (B, C, N): zero-copy reshape; N (large) becomes the lane axis.
    x_flat = x_nchw.reshape(B, C, N).astype(jnp.float32)

    tn = tn if tn is not None else _pick_tile(N, 512)
    tq = tq if tq is not None else _pick_tile(N, 512)
    tk = tk if tk is not None else _pick_tile(N, 512)
    nq, nk = N // tq, N // tk

    # (out, in, 1, 1) -> (out, in); bf16 operands for the MXU.
    wq2 = wq[:, :, 0, 0].astype(jnp.bfloat16)          # (Cq, C)
    wk2 = wk[:, :, 0, 0].astype(jnp.bfloat16)          # (Cq, C)
    wv2 = wv[:, :, 0, 0].astype(jnp.bfloat16)          # (C, C)
    bq2 = bq.reshape(Cq, 1).astype(jnp.float32)
    bv2 = bv.reshape(C, 1).astype(jnp.float32)
    gamma1 = gamma.reshape(1).astype(jnp.float32)

    # --- Pass 1: Q/K/V projections, computed exactly once, emitted as bf16. ---
    q_bf, k_bf, v_bf = pl.pallas_call(
        _qkv_projection_kernel,
        out_shape=(
            jax.ShapeDtypeStruct((B, Cq, N), jnp.bfloat16),
            jax.ShapeDtypeStruct((B, Cq, N), jnp.bfloat16),
            jax.ShapeDtypeStruct((B, C, N), jnp.bfloat16),
        ),
        grid_spec=pltpu.PrefetchScalarGridSpec(
            num_scalar_prefetch=0,
            grid=(B, N // tn),
            in_specs=[
                pl.BlockSpec((None, C, tn), lambda b, n: (b, 0, n)),  # x tile
                pl.BlockSpec((Cq, C), lambda b, n: (0, 0)),           # wq
                pl.BlockSpec((Cq, 1), lambda b, n: (0, 0)),           # bq
                pl.BlockSpec((Cq, C), lambda b, n: (0, 0)),           # wk
                pl.BlockSpec((C, C), lambda b, n: (0, 0)),            # wv
                pl.BlockSpec((C, 1), lambda b, n: (0, 0)),            # bv
            ],
            out_specs=[
                pl.BlockSpec((None, Cq, tn), lambda b, n: (b, 0, n)),
                pl.BlockSpec((None, Cq, tn), lambda b, n: (b, 0, n)),
                pl.BlockSpec((None, C, tn), lambda b, n: (b, 0, n)),
            ],
        ),
        compiler_params=pltpu.CompilerParams(
            dimension_semantics=("parallel", "parallel"),
        ),
    )(x_flat, wq2, bq2, wk2, wv2, bv2)

    # --- Pass 2: flash attention over precomputed bf16 q/k/v + residual. ---
    out_flat = pl.pallas_call(
        _flash_attention_kernel,
        out_shape=jax.ShapeDtypeStruct((B, C, N), jnp.float32),
        grid_spec=pltpu.PrefetchScalarGridSpec(
            num_scalar_prefetch=0,
            grid=(B, nq, nk),
            in_specs=[
                pl.BlockSpec((None, Cq, tq), lambda b, qi, ki: (b, 0, qi)),  # q tile
                pl.BlockSpec((None, Cq, tk), lambda b, qi, ki: (b, 0, ki)),  # k tile
                pl.BlockSpec((None, C, tk), lambda b, qi, ki: (b, 0, ki)),   # v tile
                pl.BlockSpec((None, C, tq), lambda b, qi, ki: (b, 0, qi)),   # x residual
                pl.BlockSpec(memory_space=pltpu.MemorySpace.SMEM),           # gamma
            ],
            out_specs=pl.BlockSpec((None, C, tq), lambda b, qi, ki: (b, 0, qi)),
            scratch_shapes=[
                pltpu.VMEM((1, tq), jnp.float32),   # running max
                pltpu.VMEM((1, tq), jnp.float32),   # running softmax denom
                pltpu.VMEM((C, tq), jnp.float32),   # output accumulator
            ],
        ),
        compiler_params=pltpu.CompilerParams(
            dimension_semantics=("parallel", "parallel", "arbitrary"),
            # 48 MiB is safe on v5e/v6e (128 MiB physical) and within the v7x
            # 64 MiB per-TC budget; raise toward 96 MiB on v6e for very large C.
            vmem_limit_bytes=48 * 1024 * 1024,
        ),
    )(q_bf, k_bf, v_bf, x_flat, gamma1)

    return out_flat.reshape(B, C, H, W)


def self_attention_ref(x_nchw, wq, bq, wk, bk, wv, bv, gamma):
    """Pure-JAX f32 reference mirroring the PyTorch forward."""
    B, C, H, W = x_nchw.shape
    N = H * W
    x_flat = x_nchw.reshape(B, C, N)                                   # (B, C, N)
    q = jnp.einsum('bcn,oc->bon', x_flat, wq[:, :, 0, 0]) + bq[None, :, None]
    k = jnp.einsum('bcn,oc->bon', x_flat, wk[:, :, 0, 0]) + bk[None, :, None]
    v = jnp.einsum('bcn,oc->bon', x_flat, wv[:, :, 0, 0]) + bv[None, :, None]
    energy = jnp.einsum('bci,bcj->bij', q, k)                          # (B, N, N)
    attention = jax.nn.softmax(energy, axis=-1)
    out = jnp.einsum('bcj,bij->bci', v, attention)                     # (B, C, N)
    out = out.reshape(B, C, H, W)
    return gamma[0] * out + x_nchw


if __name__ == "__main__":
    # Small shapes consistent with the module (in_channels >= 8 so C//8 >= 1).
    B, C, H, W = 2, 16, 16, 16            # N = 256 -> lane-aligned tiles
    Cq = C // 8

    key = jax.random.PRNGKey(0)
    kx, k1, k2, k3, k4, k5, k6 = jax.random.split(key, 7)

    x = jax.random.normal(kx, (B, C, H, W), dtype=jnp.float32)

    # Deterministic parameter init (PyTorch conv layout: (out, in, 1, 1)).
    wq = 0.2 * jax.random.normal(k1, (Cq, C, 1, 1), dtype=jnp.float32)
    bq = 0.1 * jax.random.normal(k2, (Cq,), dtype=jnp.float32)
    wk = 0.2 * jax.random.normal(k3, (Cq, C, 1, 1), dtype=jnp.float32)
    bk = 0.1 * jax.random.normal(k4, (Cq,), dtype=jnp.float32)
    wv = 0.2 * jax.random.normal(k5, (C, C, 1, 1), dtype=jnp.float32)
    bv = 0.1 * jax.random.normal(k6, (C,), dtype=jnp.float32)
    # PyTorch inits gamma to zeros(1); use a nonzero value so the attention path
    # actually contributes to the output under test.
    gamma = jnp.array([0.5], dtype=jnp.float32)

    # Use tq=tk=tn=128 so the online-softmax kv loop and multi-tile grid are
    # actually exercised at this small size.
    out = self_attention_pallas(x, wq, bq, wk, bk, wv, bv, gamma,
                                tq=128, tk=128, tn=128)
    out = jax.block_until_ready(out)

    ref = self_attention_ref(x, wq, bq, wk, bk, wv, bv, gamma)
    assert out.shape == (B, C, H, W)
    err = jnp.max(jnp.abs(out - ref))
    # bf16 MXU operands (f32 accumulation) -> looser tolerance than pure f32.
    assert jnp.allclose(out, ref, atol=2e-2, rtol=2e-2), f"max err {err}"

    print("KERNEL_OK")
</pallas_src>

<mosaic_0001>
module attributes {stable_mosaic.version = 11 : i64} {
  func.func @_qkv_projection_kernel(%arg0: i32, %arg1: i32, %arg2: memref<1x16x128xf32, #tpu.memory_space<vmem>>, %arg3: memref<2x16xbf16, #tpu.memory_space<vmem>>, %arg4: memref<2x1xf32, #tpu.memory_space<vmem>>, %arg5: memref<2x16xbf16, #tpu.memory_space<vmem>>, %arg6: memref<16x16xbf16, #tpu.memory_space<vmem>>, %arg7: memref<16x1xf32, #tpu.memory_space<vmem>>, %arg8: memref<1x2x128xbf16, #tpu.memory_space<vmem>>, %arg9: memref<1x2x128xbf16, #tpu.memory_space<vmem>>, %arg10: memref<1x16x128xbf16, #tpu.memory_space<vmem>>) attributes {dimension_semantics = [#tpu.dimension_semantics<parallel>, #tpu.dimension_semantics<parallel>], iteration_bounds = array<i64: 2, 2>, scalar_prefetch = 0 : i64, scratch_operands = 0 : i64, tpu.core_type = #tpu.core_type<tc>, window_params = [{transform_indices = @transform_0, window_bounds = array<i64: 1, 16, 128>}, {pipeline_mode = #tpu.pipeline_mode<synchronous>, transform_indices = @transform_1, window_bounds = array<i64: 2, 16>}, {pipeline_mode = #tpu.pipeline_mode<synchronous>, transform_indices = @transform_2, window_bounds = array<i64: 2, 1>}, {pipeline_mode = #tpu.pipeline_mode<synchronous>, transform_indices = @transform_3, window_bounds = array<i64: 2, 16>}, {pipeline_mode = #tpu.pipeline_mode<synchronous>, transform_indices = @transform_4, window_bounds = array<i64: 16, 16>}, {pipeline_mode = #tpu.pipeline_mode<synchronous>, transform_indices = @transform_5, window_bounds = array<i64: 16, 1>}, {transform_indices = @transform_6, window_bounds = array<i64: 1, 2, 128>}, {transform_indices = @transform_7, window_bounds = array<i64: 1, 2, 128>}, {transform_indices = @transform_8, window_bounds = array<i64: 1, 16, 128>}]} {
    %c0 = arith.constant 0 : index
    %c0_0 = arith.constant 0 : index
    %c0_1 = arith.constant 0 : index
    %0 = vector.load %arg2[%c0, %c0_0, %c0_1] : memref<1x16x128xf32, #tpu.memory_space<vmem>>, vector<1x16x128xf32>
    %1 = vector.shape_cast %0 : vector<1x16x128xf32> to vector<16x128xf32>
    %2 = arith.truncf %1 : vector<16x128xf32> to vector<16x128xbf16>
    %c0_2 = arith.constant 0 : index
    %c0_3 = arith.constant 0 : index
    %3 = vector.load %arg3[%c0_2, %c0_3] : memref<2x16xbf16, #tpu.memory_space<vmem>>, vector<2x16xbf16>
    %cst = arith.constant dense<0.000000e+00> : vector<2x128xf32>
    %4 = tpu.matmul %3, %2, %cst {dimension_numbers = #tpu.dot_dimension_numbers<[1], [0], [0], [1], [0, 0, 1, 1], [], []>} : vector<2x16xbf16>, vector<16x128xbf16>, vector<2x128xf32> -> vector<2x128xf32>
    %c0_4 = arith.constant 0 : index
    %c0_5 = arith.constant 0 : index
    %5 = vector.load %arg4[%c0_4, %c0_5] : memref<2x1xf32, #tpu.memory_space<vmem>>, vector<2x1xf32>
    %6 = vector.broadcast %5 : vector<2x1xf32> to vector<2x128xf32>
    %7 = arith.addf %4, %6 : vector<2x128xf32>
    %c0_6 = arith.constant 0 : index
    %c0_7 = arith.constant 0 : index
    %8 = vector.load %arg5[%c0_6, %c0_7] : memref<2x16xbf16, #tpu.memory_space<vmem>>, vector<2x16xbf16>
    %cst_8 = arith.constant dense<0.000000e+00> : vector<2x128xf32>
    %9 = tpu.matmul %8, %2, %cst_8 {dimension_numbers = #tpu.dot_dimension_numbers<[1], [0], [0], [1], [0, 0, 1, 1], [], []>} : vector<2x16xbf16>, vector<16x128xbf16>, vector<2x128xf32> -> vector<2x128xf32>
    %c0_9 = arith.constant 0 : index
    %c0_10 = arith.constant 0 : index
    %10 = vector.load %arg6[%c0_9, %c0_10] : memref<16x16xbf16, #tpu.memory_space<vmem>>, vector<16x16xbf16>
    %cst_11 = arith.constant dense<0.000000e+00> : vector<16x128xf32>
    %11 = tpu.matmul %10, %2, %cst_11 {dimension_numbers = #tpu.dot_dimension_numbers<[1], [0], [0], [1], [0, 0, 1, 1], [], []>} : vector<16x16xbf16>, vector<16x128xbf16>, vector<16x128xf32> -> vector<16x128xf32>
    %c0_12 = arith.constant 0 : index
    %c0_13 = arith.constant 0 : index
    %12 = vector.load %arg7[%c0_12, %c0_13] : memref<16x1xf32, #tpu.memory_space<vmem>>, vector<16x1xf32>
    %13 = vector.broadcast %12 : vector<16x1xf32> to vector<16x128xf32>
    %14 = arith.addf %11, %13 : vector<16x128xf32>
    %15 = arith.truncf %7 : vector<2x128xf32> to vector<2x128xbf16>
    %c0_14 = arith.constant 0 : index
    %c0_15 = arith.constant 0 : index
    %c0_16 = arith.constant 0 : index
    %16 = vector.load %arg8[%c0_14, %c0_15, %c0_16] : memref<1x2x128xbf16, #tpu.memory_space<vmem>>, vector<1x2x128xbf16>
    %17 = vector.shape_cast %16 : vector<1x2x128xbf16> to vector<2x128xbf16>
    %18 = vector.shape_cast %15 : vector<2x128xbf16> to vector<1x2x128xbf16>
    tpu.vector_store %arg8[%c0_14, %c0_15, %c0_16], %18 {strides = array<i32>} : memref<1x2x128xbf16, #tpu.memory_space<vmem>>, vector<1x2x128xbf16>,
    %19 = arith.truncf %9 : vector<2x128xf32> to vector<2x128xbf16>
    %c0_17 = arith.constant 0 : index
    %c0_18 = arith.constant 0 : index
    %c0_19 = arith.constant 0 : index
    %20 = vector.load %arg9[%c0_17, %c0_18, %c0_19] : memref<1x2x128xbf16, #tpu.memory_space<vmem>>, vector<1x2x128xbf16>
    %21 = vector.shape_cast %20 : vector<1x2x128xbf16> to vector<2x128xbf16>
    %22 = vector.shape_cast %19 : vector<2x128xbf16> to vector<1x2x128xbf16>
    tpu.vector_store %arg9[%c0_17, %c0_18, %c0_19], %22 {strides = array<i32>} : memref<1x2x128xbf16, #tpu.memory_space<vmem>>, vector<1x2x128xbf16>,
    %23 = arith.truncf %14 : vector<16x128xf32> to vector<16x128xbf16>
    %c0_20 = arith.constant 0 : index
    %c0_21 = arith.constant 0 : index
    %c0_22 = arith.constant 0 : index
    %24 = vector.load %arg10[%c0_20, %c0_21, %c0_22] : memref<1x16x128xbf16, #tpu.memory_space<vmem>>, vector<1x16x128xbf16>
    %25 = vector.shape_cast %24 : vector<1x16x128xbf16> to vector<16x128xbf16>
    %26 = vector.shape_cast %23 : vector<16x128xbf16> to vector<1x16x128xbf16>
    tpu.vector_store %arg10[%c0_20, %c0_21, %c0_22], %26 {strides = array<i32>} : memref<1x16x128xbf16, #tpu.memory_space<vmem>>, vector<1x16x128xbf16>,
    return
  }
  func.func @transform_0(%arg0: i32, %arg1: i32) -> (i32, i32, i32) {
    %c0_i32 = arith.constant 0 : i32
    %c0_i32_0 = arith.constant 0 : i32
    return %arg0, %c0_i32, %arg1 : i32, i32, i32
  }
  func.func @transform_1(%arg0: i32, %arg1: i32) -> (i32, i32) {
    %c0_i32 = arith.constant 0 : i32
    %c0_i32_0 = arith.constant 0 : i32
    %c0_i32_1 = arith.constant 0 : i32
    return %c0_i32, %c0_i32_0 : i32, i32
  }
  func.func @transform_2(%arg0: i32, %arg1: i32) -> (i32, i32) {
    %c0_i32 = arith.constant 0 : i32
    %c0_i32_0 = arith.constant 0 : i32
    %c0_i32_1 = arith.constant 0 : i32
    return %c0_i32, %c0_i32_0 : i32, i32
  }
  func.func @transform_3(%arg0: i32, %arg1: i32) -> (i32, i32) {
    %c0_i32 = arith.constant 0 : i32
    %c0_i32_0 = arith.constant 0 : i32
    %c0_i32_1 = arith.constant 0 : i32
    return %c0_i32, %c0_i32_0 : i32, i32
  }
  func.func @transform_4(%arg0: i32, %arg1: i32) -> (i32, i32) {
    %c0_i32 = arith.constant 0 : i32
    %c0_i32_0 = arith.constant 0 : i32
    %c0_i32_1 = arith.constant 0 : i32
    return %c0_i32, %c0_i32_0 : i32, i32
  }
  func.func @transform_5(%arg0: i32, %arg1: i32) -> (i32, i32) {
    %c0_i32 = arith.constant 0 : i32
    %c0_i32_0 = arith.constant 0 : i32
    %c0_i32_1 = arith.constant 0 : i32
    return %c0_i32, %c0_i32_0 : i32, i32
  }
  func.func @transform_6(%arg0: i32, %arg1: i32) -> (i32, i32, i32) {
    %c0_i32 = arith.constant 0 : i32
    %c0_i32_0 = arith.constant 0 : i32
    return %arg0, %c0_i32, %arg1 : i32, i32, i32
  }
  func.func @transform_7(%arg0: i32, %arg1: i32) -> (i32, i32, i32) {
    %c0_i32 = arith.constant 0 : i32
    %c0_i32_0 = arith.constant 0 : i32
    return %arg0, %c0_i32, %arg1 : i32, i32, i32
  }
  func.func @transform_8(%arg0: i32, %arg1: i32) -> (i32, i32, i32) {
    %c0_i32 = arith.constant 0 : i32
    %c0_i32_0 = arith.constant 0 : i32
    return %arg0, %c0_i32, %arg1 : i32, i32, i32
  }
}

</mosaic_0001>

<bundles_post_ra>
// kernel: tpu_custom_call.1
= control target key start
LH: loop header
LB: loop body
LE: loop exit
PB: predicated region body
PF: predicated region fallthrough
CT: control target
= control target key end

     0   :  { %s1396_s0 = inlined_call_operand.hbm [shape: f32[2,16,256], index: 0, kind: input, shape index: {}]   ;;  %s1397_s1 = inlined_call_operand.vmem [shape: bf16[2,16], index: 1, kind: input, shape index: {}]   ;;  %s1398_s2 = inlined_call_operand.vmem [shape: f32[2,1], index: 2, kind: input, shape index: {}]   ;;  %s1399_s3 = inlined_call_operand.vmem [shape: bf16[2,16], index: 3, kind: input, shape index: {}]   ;;  %s1400_s4 = inlined_call_operand.vmem [shape: bf16[16,16], index: 4, kind: input, shape index: {}]   ;;  %s1401_s5 = inlined_call_operand.vmem [shape: f32[16,1], index: 5, kind: input, shape index: {}]   ;;  %s1402_s6 = inlined_call_operand.hbm [shape: bf16[2,2,256], index: 6, kind: output, shape index: {0}]   ;;  %s1403_s7 = inlined_call_operand.hbm [shape: bf16[2,2,256], index: 7, kind: output, shape index: {1}]   ;;  %s1404_s8 = inlined_call_operand.hbm [shape: bf16[2,16,256], index: 8, kind: output, shape index: {2}]  }
   0x1   :  { %1415 = sst [smem:[#allocation16_spill]] %s1396_s0 }
   0x2   :  { %1416 = sst [smem:[#allocation17_spill]] %s1400_s4 }
   0x3   :  { %1417 = sst [smem:[#allocation18_spill]] %s1402_s6 }
   0x4   :  { %1418 = sst [smem:[#allocation19_spill]] %s1403_s7 }
   0x5   :  { %1419 = sst [smem:[#allocation20_spill]] %s1404_s8 }
   0x6   :  { %14 = vsyncpa [#allocation3], 0 }
   0x7   :  { %16 = vsyncpa [#allocation3 + $0x1], 0 }
   0x8   :  { %17 = vsyncpa [#allocation4], 0 }
   0x9   :  { %19 = vsyncpa [#allocation4 + $0x1], 0 }
   0xa   :  { %20 = vsyncpa [#allocation7], 0 }
   0xb   :  { %22 = vsyncpa [#allocation7 + $0x1], 0  ;;  %s1131_s27 = smov 0   ;;  %s1133_s28 = smov 0  }
   0xc   :  { %s1135_s29 = smov 0   ;;  %s1137_s30 = smov 0  }
   0xd   :  { %s1139_s9 = smov 0   ;;  %s1141_s10 = smov 0  }
   0xe   :  { %s1143_s11 = smov 0   ;;  %s1145_s12 = smov 0  }
   0xf LB: > { %1420 = sst [smem:[#allocation12_spill]] %s1043_s27  ;;  %s1172_s13 = sadd.s32 4294967295, %s1071_s12   ;;  %s1071_s12 = sphi %s1145_s12, %s28_s12   ;;  %s1067_s11 = sphi %s1143_s11, %s1448_s11   ;;  %s1063_s10 = sphi %s1141_s10, %s1447_s10   ;;  %s1059_s9 = sphi %s1139_s9, %s1446_s9   ;;  %s1055_s30 = sphi %s1137_s30, %s1445_s30   ;;  %s1051_s29 = sphi %s1135_s29, %s1444_s29   ;;  %s1047_s28 = sphi %s1133_s28, %s1443_s28   ;;  %s1043_s27 = sphi %s1131_s27, %s1442_s27  }
  0x10   : > { %s1413_s14 = sadd.s32 4294967294, %s1071_s12   ;;  %s37_s15 = sadd.s32 1, %s1063_s10 }
  0x11   : > { %s40_s16 = sadd.s32 1, %s1067_s11  ;;  %p38_p0 = scmp.ge.s32.totalorder %s37_s15, 2 }
  0x12   : > { %s49_s17 = sadd.s32 1, %s1051_s29  ;;  %p56_p1 = scmp.ne.s32.totalorder %s1051_s29, %s1047_s28 }
  0x13   : > { %p57_p2 = scmp.eq.s32.totalorder %s1071_s12, 0  ;;  %s1450_s15 = smov (%p38_p0, %s37_s15), 0 }
  0x14   : > { %1421 = sst [smem:[#allocation13_spill]] %s1450_s15  ;;  %s1452_s16 = smov (!%p38_p0, %s40_s16), %s1067_s11 }
  0x15   : > { %s45_s18 = ssub.s32 %s1063_s10, %s1450_s15  ;;  %p1186_p3 = por %p57_p2, %p56_p1 }
  0x16   : > { %p42_p4 = scmp.ge.s32.totalorder %s1452_s16, 2  ;;  %p62_p5 = scmp.ne.s32.totalorder %s1047_s28, %s1043_s27 }
  0x17   : > { %p63_p6 = scmp.eq.s32.totalorder %s1172_s13, 0  ;;  %p193_p7 = scmp.eq.s32.totalorder %s1172_s13, 3 }
  0x18   : > { %s1454_s16 = smov (%p42_p4, %s1452_s16), 0  ;;  %p199_p10 = scmp.eq.s32.totalorder %s1413_s14, 3 }
  0x19   : > { %1423 = sst [smem:[#allocation14_spill]] %s1454_s16  ;;  %p1196_p8 = por %p63_p6, %p62_p5 }
  0x1a   : > { %p1200_p9 = por %p193_p7, %p56_p1  ;;  %s44_s22 = ssub.s32 %s1067_s11, %s1454_s16 }
  0x1b   : > { %s46_s23 = sor.u32 %s45_s18, %s44_s22  ;;  %p1208_p12 = por %p199_p10, %p62_p5 }
  0x1c   : > { %s1425_s21 = scalar_select %p1200_p9, 1, 0 }
  0x1d   : > { %p47_p11 = scmp.eq.s32.totalorder %s46_s23, 0  ;;  %p813_p13 = scmp.lt.s32.totalorder %s1071_s12, 4 }
  0x1e   : > { %1426 = sst [smem:[#allocation15_spill]] %s1425_s21  ;;  %s290_s25 = sand.u32 1, %s1051_s29  }
  0x1f   : > { %s1215_s26 = scalar_select %p47_p11, %s1051_s29, %s49_s17  }
  0x20   : > { %s739_s15 = sshll.u32 %s290_s25, 4  ;;  %s740_s27 = sshll.u32 %s1067_s11, 2 }
  0x21   : > { %s299_s8 = sadd.s32 %s1063_s10, %s740_s27  ;;  %s294_s6 = scalar_lea.vmem [#allocation2], %s739_s15 }
  0x22   : > { %s302_s7 = sshll.u32 %s294_s6, 4  ;;  %s741_s21 = sshll.u32 %s299_s8, 7  ;;  %s303_s7 = int_to_ptr.vmem [resolvable:$true] %s302_s7 }
  0x23   : > { %s1428_s0 = sld [smem:[#allocation16_spill]]  ;;  %p1224_p0 = pnand %p813_p13, %p1186_p3 }
  0x24   : > { %s291_s23 = scalar_lea.sflag [#allocation3], %s290_s25  ;;  %s904_s17 = scalar_lea.vmem %s303_s7, 256 }
  0x25   : > { %p893_p1 = pneg %p1224_p0  ;;  %p905_p2 = scmp.ne.s32.totalorder %s303_s7, %s904_s17 }
  0x26   : > { %s1073_s6 = smov [#allocation2]  }
  0x27   : > { %p907_p4 = pnand %p905_p2, %p893_p1  ;;  %s909_s8 = sshll.u32 %s1073_s6, 4  ;;  %s910_s8 = int_to_ptr.vmem [resolvable:$false] %s909_s8 }
  0x28   : > { %s911_s27 = scalar_lea.vmem %s910_s8, 512  ;;  %p912_p6 = scmp.lt.s32.totalorder %s303_s7, %s910_s8 }
  0x29   : > { %s301_s18 = scalar_lea.hbm %s1428_s0, %s741_s21  ;;  %p908_p5 = pneg %p907_p4 }
  0x2a   : > { %p913_p7 = scmp.lt.s32.totalorder %s911_s27, %s904_s17 }
  0x2c   : > { %p914_p10 = por %p913_p7, %p912_p6 }
  0x2e   : > { %p915_p11 = pnand %p914_p10, %p908_p5 }
  0x30   : > { %918 = shalt.err (!%p915_p11)
}
  0x31   : > { %s1074_s4 = smov 256   ;;  %s1075_s15 = smov 128  }
  0x32   : > { %s1076_s16 = smov 8   ;;  %p742_p3 = scmp.ge.s32.totalorder %s1071_s12, 1 }
  0x33   : > { %802 = dma.hbm_to_vmem [thread:$0]  (!%p1224_p0), %s301_s18, 256, %s303_s7, %s291_s23, %s1074_s4, %s1075_s15, %s1076_s16  }
  0x34   : > { %p310_p13 = scmp.lt.s32.totalorder %s1071_s12, 5 }
  0x36   : > { %p311_p1 = pnand %p742_p3, %p310_p13 }
  0x37   : > { %s1235_s19 = sand.u32 (!%p311_p1), 1, %s1047_s28  }
  0x38   : > { %314 = sbr.rel (%p311_p1) target bundleno = 333 (0x14d), region = 44  ;;  %s743_s21 = sshll.u32 (!%p311_p1), %s1235_s19, 4 }
  0x39   : > { %s317_s25 = scalar_lea.sflag (!%p311_p1), [#allocation3], %s1235_s19  ;;  %s320_s17 = scalar_lea.vmem (!%p311_p1), [#allocation2], %s743_s21 }
  0x3d   : > { %1030 = dma.done.wait (%p1196_p8), %s317_s25, 256  }
  0x3e   : > { %1032 = vsyncadd (%p1196_p8), %s317_s25, 4294967040  ;;  %v1077_v0 = vmov 0.0   ;;  %vm1078_vm0 = vmmov 0   ;;  %v1079_v1 = vmov 0   ;;  %v362_v2 = vld [vmem:[%s320_s17] sm:$0xff]  ;;  %v363_v3 = vld [vmem:[%s320_s17 + $0x8] sm:$0xff] }
  0x3f   : > { %773 = vmatprep.subr.bf16.mxu0 %v1077_v0  ;;  %775 = vmatprep.mubr.msk.bf16.mxu0 %vm1078_vm0, %v1077_v0  ;;  %v364_v4 = vpack.c.bf16 %v363_v3, %v362_v2  ;;  %v366_v5 = vld [vmem:[%s1398_s2] sm:$0x3]  ;;  %vm372_vm1 = vcmask 130048   ;;  %v463_v8 = vld [vmem:[%s1401_s5 + $0x8] sm:$0xff]  ;;  %s1430_s25 = sld [smem:[#allocation17_spill]]  ;;  %s752_s17 = sshll.u32 %s1059_s9, 1 }
  0x40   : > { %779 = vmatprep.subr.bf16.mxu1 %v1077_v0  ;;  %781 = vmatprep.mubr.msk.bf16.mxu1 %vm1078_vm0, %v1077_v0  ;;  %v365_v6 = vld [vmem:[%s1397_s1] sm:$0x1]  ;;  %s557_s7 = sadd.s32 %s1055_s30, %s752_s17  ;;  %s541_s18 = sand.u32 1, %s1172_s13  }
  0x41   : > { %888 = vset.pattern.permute.xlu0 %v1079_v1  ;;  %889 = vset.pattern.permute.xlu1 %v1079_v1  ;;  %v416_v7 = vld [vmem:[%s1399_s3] sm:$0x1]  ;;  %s753_s20 = sshll.u32 %s557_s7, 4  ;;  %s353_s22 = scalar_lea.vmem [#allocation6], %s1235_s19 }
  0x42   : > { %774 = vmatpush3.bf16.msra.mxu0 %v364_v4  ;;  %780 = vmatpush3.bf16.msra.mxu1 %v364_v4  ;;  %v462_v9 = vld [vmem:[%s1401_s5] sm:$0xff]  ;;  %s576_s23 = sshll.u32 %s353_s22, 4  ;;  %s1414_s6 = scalar_lea.vmem [#allocation5], %s1235_s19  ;;  %s1276_s23 = int_to_ptr.vmem [resolvable:$true] %s576_s23 }
  0x43   : > { %785 = vmatprep.subr.bf16.mxu0 %v1077_v0  ;;  %369 = vperm.xlu0 %888, %v366_v5   ;;  %s561_s8 = sshll.u32 %s1414_s6, 4  ;;  %s1432_s16 = sld [smem:[#allocation19_spill]]  ;;  %s1284_s8 = int_to_ptr.vmem [resolvable:$true] %s561_s8 }
  0x44   : > { %471 = vperm.xlu1 %889, %v463_v8   ;;  %s1433_s7 = sld [smem:[#allocation18_spill]]  ;;  %s1286_s4 = scalar_lea.sflag [#allocation7], %s541_s18 }
  0x45   : > { %776 = vmatmul.mubr.msk.bf16.vlgmr.msra.gmra.mxu0 %vm372_vm1, %v365_v6  ;;  %782 = vmatmul.mubr.msk.bf16.vlgmr.msra.gmra.mxu1 %vm372_vm1, %v416_v7  ;;  %v890_v10 = vld [vmem:[%s1430_s25] sm:$0xff]   ;;  %s919_s15 = scalar_lea.vmem %s1276_s23, 16  ;;  %s1080_s13 = smov [#allocation6]  }
  0x46   : > { %786 = vmatpush3.bf16.msra.mxu0 %v364_v4  ;;  %787 = vmatprep.mubr.msk.bf16.mxu0 %vm1078_vm0, %v1077_v0  ;;  %p920_p8 = scmp.ne.s32.totalorder %s1276_s23, %s919_s15  ;;  %s923_s6 = sshll.u32 %s1080_s13, 4  ;;  %s924_s6 = int_to_ptr.vmem [resolvable:$false] %s923_s6 }
  0x47   : > { %466 = vperm.xlu0 %888, %v462_v9   ;;  %p926_p4 = scmp.lt.s32.totalorder %s1276_s23, %s924_s6 }
  0x48   : > { %p921_p0 = pnand %p920_p8, %p1200_p9 }
  0x49   : > { %s1274_s21 = scalar_lea.hbm %s1432_s16, %s753_s20 }
  0x4a   : > { %s1282_s14 = scalar_lea.hbm %s1433_s7, %s753_s20  ;;  %p922_p2 = pneg %p921_p0 }
  0x4d   : > { %788 = vmatmul.mubr.msk.bf16.vlgmr.msra.gmra.mxu0 %vm372_vm1, %v890_v10 }
  0xbe   : > { %v370_v11 = vpop.permute.xlu0 %369 }
 0x105   : > { %v410_v12 = vpop.f32.mrf.mxu0  ;;  %v454_v13 = vpop.f32.mrf.mxu1 }
 0x106   : > { %v411_v14 = vadd.f32 %v410_v12, %v370_v11  ;;  %v525_v15 = vpack.c.bf16 %v454_v13, %v454_v13 }
 0x107   : > { %v777_v16 = vpop.f32.mrf.mxu0  ;;  %v783_v17 = vpop.f32.mrf.mxu1 }
 0x108   : > { %v523_v18 = vpack.c.bf16 %v411_v14, %v411_v14  ;;  %526 = vst [vmem:[%s353_s22] sm:$0x1] %v525_v15  ;;  %s925_s22 = scalar_lea.vmem %s924_s6, 32 }
 0x109   : > { %v413_v19 = vpop.f32.mrf.mxu0  ;;  %v457_v20 = vpop.f32.mrf.mxu1  ;;  %p927_p5 = scmp.lt.s32.totalorder %s925_s22, %s919_s15 }
 0x10b   : > { %p928_p6 = por %p927_p5, %p926_p4 }
 0x10d   : > { %p929_p7 = pnand %p928_p6, %p922_p2 }
 0x10f   : > { %932 = shalt.err (!%p929_p7)
}
 0x110   : > { %s933_s18 = scalar_lea.hbm %s1274_s21, 16  ;;  %s937_s13 = scalar_lea.hbm %s1432_s16, 64 }
 0x111   : > { %p934_p10 = scmp.ne.s32.totalorder %s1274_s21, %s933_s18  ;;  %p938_p13 = scmp.lt.s32.totalorder %s1274_s21, %s1432_s16 }
 0x112   : > { %p939_p1 = scmp.lt.s32.totalorder %s937_s13, %s933_s18 }
 0x113   : > { %p935_p11 = pnand %p934_p10, %p1200_p9 }
 0x114   : > { %p940_p8 = por %p939_p1, %p938_p13 }
 0x115   : > { %p936_p3 = pneg %p935_p11 }
 0x117   : > { %p941_p0 = pnand %p940_p8, %p936_p3 }
 0x119   : > { %944 = shalt.err (!%p941_p0)
}
 0x11a   : > { %794 = dma.vmem_to_hbm [thread:$0]  (%p1200_p9), %s1276_s23, 16, %s1274_s21, %s1286_s4   ;;  %v778_v21 = vpop.f32.mrf.mxu0  ;;  %v784_v22 = vpop.f32.mrf.mxu1 }
 0x11b   : > { %s1434_s6 = scalar_lea.vmem [#allocation5], %s1235_s19  ;;  %s756_s0 = sshll.u32 %s1059_s9, 2 }
 0x11c   : > { %524 = vst [vmem:[%s1434_s6] sm:$0x1] %v523_v18  ;;  %s538_s15 = scalar_lea.sflag [#allocation4], %s1235_s19  ;;  %s945_s22 = scalar_lea.vmem %s1284_s8, 16 }
 0x11d   : > { %p946_p2 = scmp.ne.s32.totalorder %s1284_s8, %s945_s22  ;;  %s1081_s18 = smov [#allocation5]  }
 0x11e   : > { %s949_s20 = sshll.u32 %s1081_s18, 4  ;;  %s950_s20 = int_to_ptr.vmem [resolvable:$false] %s949_s20 }
 0x11f   : > { %p947_p4 = pnand %p946_p2, %p1200_p9  ;;  %s951_s25 = scalar_lea.vmem %s950_s20, 32 }
 0x120   : > { %p952_p6 = scmp.lt.s32.totalorder %s1284_s8, %s950_s20  ;;  %p953_p7 = scmp.lt.s32.totalorder %s951_s25, %s945_s22 }
 0x121   : > { %p948_p5 = pneg %p947_p4 }
 0x122   : > { %p954_p10 = por %p953_p7, %p952_p6 }
 0x124   : > { %p955_p11 = pnand %p954_p10, %p948_p5 }
 0x126   : > { %958 = shalt.err (!%p955_p11)
}
 0x127   : > { %s959_s23 = scalar_lea.hbm %s1282_s14, 16  ;;  %s963_s17 = scalar_lea.hbm %s1433_s7, 64 }
 0x128   : > { %p960_p3 = scmp.ne.s32.totalorder %s1282_s14, %s959_s23  ;;  %p964_p8 = scmp.lt.s32.totalorder %s1282_s14, %s1433_s7 }
 0x129   : > { %p965_p0 = scmp.lt.s32.totalorder %s963_s17, %s959_s23 }
 0x12a   : > { %p961_p13 = pnand %p960_p3, %p1200_p9 }
 0x12b   : > { %p966_p2 = por %p965_p0, %p964_p8 }
 0x12c   : > { %p962_p1 = pneg %p961_p13 }
 0x12e   : > { %p967_p4 = pnand %p966_p2, %p962_p1 }
 0x130   : > { %970 = shalt.err (!%p967_p4)
}
 0x131   : > { %793 = dma.vmem_to_hbm [thread:$0]  (%p1200_p9), %s1284_s8, 16, %s1282_s14, %s538_s15   ;;  %v516_v23 = vpop.f32.mrf.mxu0  ;;  %v472_v24 = vpop.permute.xlu1 %471 }
 0x132   : > { %s587_s22 = sadd.s32 %s1055_s30, %s756_s0  ;;  %v467_v25 = vpop.permute.xlu0 %466  ;;  %s1435_s20 = sshll.u32 %s1235_s19, 3 }
 0x133   : > { %v789_v26 = vpop.f32.mrf.mxu0  ;;  %s360_s25 = scalar_lea.vmem [#allocation8], %s1435_s20  ;;  %s757_s21 = sshll.u32 %s587_s22, 6  ;;  %v517_v28 = vadd.f32 %v516_v23, %v467_v25 }
 0x134   : > { %s590_s23 = sshll.u32 %s360_s25, 4  ;;  %s1436_s30 = sld [smem:[#allocation20_spill]]  ;;  %s1338_s23 = int_to_ptr.vmem [resolvable:$true] %s590_s23 }
 0x135   : > { %v519_v27 = vpop.f32.mrf.mxu0  ;;  %s971_s19 = scalar_lea.vmem %s1338_s23, 128  ;;  %s1082_s15 = smov [#allocation8]  }
 0x136   : > { %v520_v29 = vadd.f32 %v519_v27, %v472_v24  ;;  %p972_p5 = scmp.ne.s32.totalorder %s1338_s23, %s971_s19  ;;  %s975_s13 = sshll.u32 %s1082_s15, 4  ;;  %s976_s13 = int_to_ptr.vmem [resolvable:$false] %s975_s13 }
 0x137   : > { %v790_v30 = vpop.f32.mrf.mxu0  ;;  %s977_s17 = scalar_lea.vmem %s976_s13, 256  ;;  %p978_p10 = scmp.lt.s32.totalorder %s1338_s23, %s976_s13 }
 0x138   : > { %v765_v31 = vpack.c.bf16 %v520_v29, %v517_v28  ;;  %p973_p6 = pnand %p972_p5, %p1200_p9  ;;  %p979_p11 = scmp.lt.s32.totalorder %s977_s17, %s971_s19 }
 0x13a   : > { %s1437_s8 = smov %s1436_s30  ;;  %s1343_s0 = scalar_lea.hbm %s1436_s30, %s757_s21  ;;  %766 = vst [vmem:[%s360_s25] sm:$0xff] %v765_v31  }
 0x13b   : > { %p974_p7 = pneg %p973_p6  ;;  %p980_p3 = por %p979_p11, %p978_p10 }
 0x13d   : > { %p981_p13 = pnand %p980_p3, %p974_p7 }
 0x13f   : > { %984 = shalt.err (!%p981_p13)
}
 0x140   : > { %s985_s6 = scalar_lea.hbm %s1343_s0, 128  ;;  %s989_s20 = scalar_lea.hbm %s1437_s8, 512 }
 0x141   : > { %p986_p1 = scmp.ne.s32.totalorder %s1343_s0, %s985_s6  ;;  %p990_p2 = scmp.lt.s32.totalorder %s1343_s0, %s1437_s8 }
 0x142   : > { %p991_p4 = scmp.lt.s32.totalorder %s989_s20, %s985_s6 }
 0x143   : > { %p987_p8 = pnand %p986_p1, %p1200_p9 }
 0x144   : > { %p992_p5 = por %p991_p4, %p990_p2 }
 0x145   : > { %p988_p0 = pneg %p987_p8 }
 0x147   : > { %p993_p6 = pnand %p992_p5, %p988_p0 }
 0x149   : > { %996 = shalt.err (!%p993_p6)
}
 0x14a   : > { %s1083_s14 = smov 64   ;;  %s1084_s9 = smov 128  }
 0x14b   : > { %s1085_s30 = smov 4  }
 0x14c   : > { %795 = dma.vmem_to_hbm [thread:$0]  (%p1200_p9), %s1338_s23, 128, %s1343_s0, %s1286_s4, %s1083_s14, %s1084_s9, %s1085_s30  }
 0x14d PF: > { %s1438_s19 = sld [smem:[#allocation12_spill]]  ;;  %p814_p7 = scmp.ge.s32.totalorder %s1071_s12, 2 }
 0x14f   : > { %p804_p10 = pnand %p814_p7, %p1208_p12 }
 0x151   : > { %p805_p11 = pneg %p804_p10 }
 0x153   : > { %s605_s15 = sand.u32 1, %s1438_s19  }
 0x154   : > { %s606_s13 = scalar_lea.sflag [#allocation4], %s605_s15 }
 0x155   : > { %1034 = dma.done.wait (%p805_p11), %s606_s13, 16  }
 0x156   : > { %1036 = vsyncadd (%p805_p11), %s606_s13, 4294967280  ;;  %s1439_s17 = sadd.s32 4294967294, %s1071_s12  }
 0x157   : > { %s613_s6 = sand.u32 1, %s1439_s17  }
 0x158   : > { %s614_s18 = scalar_lea.sflag [#allocation7], %s613_s6 }
 0x159   : > { %1038 = dma.done.wait (%p805_p11), %s614_s18, 144  }
 0x15a   : > { %1040 = vsyncadd (%p805_p11), %s614_s18, 4294967152  ;;  %s28_s12 = sadd.s32 1, %s1071_s12   ;;  %s1440_s24 = sld [smem:[#allocation13_spill]] }
 0x15b   : > { %p25_p9 = scmp.ge.s32.totalorder %s28_s12, 6   ;;  %s1441_s4 = sld [smem:[#allocation14_spill]] }
 0x15c   : > { %s1442_s27 = smov %s1047_s28  ;;  %s1443_s28 = smov %s1051_s29 }
 0x15d   : > { %s1444_s29 = smov %s1215_s26  ;;  %s1445_s30 = smov %s1063_s10 }
 0x15e   : > { %s1446_s9 = smov %s1067_s11  ;;  %27 = sbr.rel (!%p25_p9) target bundleno = 15 (0xf), region = 121 }
 0x160   : > { %s1447_s10 = smov %s1440_s24 }
 0x161   : > { %s1448_s11 = smov %s1441_s4 }
 0x163   :  { %627 = vsyncpa [#allocation3], 1 }
 0x164   :  { %629 = vsyncpa [#allocation3 + $0x1], 1 }
 0x165   :  { %630 = vsyncpa [#allocation4], 1 }
 0x166   :  { %632 = vsyncpa [#allocation4 + $0x1], 1 }
 0x167   :  { %633 = vsyncpa [#allocation7], 1 }
 0x168   :  { %635 = vsyncpa [#allocation7 + $0x1], 1 }

</bundles_post_ra>
